<compile_context>
chip_gen: v7x
topology: tpu7x:2x2x1
jax: 0.10.0
libtpu: 0.0.40
codegen_flags: <defaults>
</compile_context>

<pallas_src>
import functools

import jax
import jax.numpy as jnp
import numpy as np
from jax import lax
from jax.experimental import pallas as pl
from jax.experimental.pallas import tpu as pltpu


# --------------------------------------------------------------------------
# Pallas kernels
# --------------------------------------------------------------------------
def _pw_bn_kernel(x_ref, w_ref, s_ref, b_ref, o_ref, *, relu):
    """1x1 conv as matmul over channels, fused per-channel BN (+ optional ReLU)."""
    acc = jnp.dot(x_ref[...], w_ref[...], preferred_element_type=jnp.float32)
    out = acc * s_ref[...] + b_ref[...]
    if relu:
        out = jnp.maximum(out, 0.0)
    o_ref[...] = out.astype(o_ref.dtype)


def _pw_bn_add_relu_kernel(x_ref, w_ref, s_ref, b_ref, r_ref, o_ref):
    """1x1 conv + BN + identity-residual add + ReLU (final stage, fused)."""
    acc = jnp.dot(x_ref[...], w_ref[...], preferred_element_type=jnp.float32)
    out = acc * s_ref[...] + b_ref[...] + r_ref[...].astype(jnp.float32)
    o_ref[...] = jnp.maximum(out, 0.0).astype(o_ref.dtype)


def _pw_bn_proj_add_relu_kernel(x_ref, w_ref, s_ref, b_ref,
                                xs_ref, ws_ref, ss_ref, bs_ref, o_ref):
    """conv3(1x1)+bn3 fused with the projection shortcut (1x1 conv+BN), add, ReLU."""
    main = jnp.dot(x_ref[...], w_ref[...], preferred_element_type=jnp.float32)
    main = main * s_ref[...] + b_ref[...]
    sc = jnp.dot(xs_ref[...], ws_ref[...], preferred_element_type=jnp.float32)
    sc = sc * ss_ref[...] + bs_ref[...]
    o_ref[...] = jnp.maximum(main + sc, 0.0).astype(o_ref.dtype)


def _conv3x3_bn_relu_kernel(x_ref, w_ref, s_ref, b_ref, o_ref, *,
                            stride, th, wo, cin, cout):
    """3x3 conv (pad=1, stride) + BN + ReLU on a strip of TH output rows.

    stride == 1:
        x_ref : (1, Hp, Wp, Cin)      -- padded plane, resident per batch elem
    stride  > 1:
        x_ref : (1, Hp, 3, Wo, Cin)   -- per-kw width-decimated padded plane
    w_ref : (3, 3*Cin, Cout)          -- per-kh weights, K ordered (kw, cin)
    o_ref : (1, TH*Wo, Cout)          -- flattened output row strip
    """
    j = pl.program_id(1)
    row0 = j * (th * stride)                      # first padded input row of strip
    acc = jnp.zeros((th * wo, cout), jnp.float32)
    for kh in range(3):
        if stride == 1:
            rows = x_ref[0, pl.ds(row0 + kh, th)]            # (TH, Wp, Cin)
            taps = [rows[:, kw:kw + wo, :] for kw in range(3)]
        else:
            win = x_ref[0, pl.ds(row0 + kh, (th - 1) * stride + 1)]
            rows = win[::stride]                             # (TH, 3, Wo, Cin)
            taps = [rows[:, kw] for kw in range(3)]
        # fat-K patch: (TH*Wo, 3*Cin), K ordered (kw, cin) to match w_ref
        patch = jnp.concatenate(taps, axis=-1).reshape(th * wo, 3 * cin)
        acc = acc + jnp.dot(patch, w_ref[kh],
                            preferred_element_type=jnp.float32)
    out = acc * s_ref[...] + b_ref[...]
    o_ref[0] = jnp.maximum(out, 0.0).astype(o_ref.dtype)


# --------------------------------------------------------------------------
# Tiling heuristics / compiler params
# --------------------------------------------------------------------------
def _compiler_params(sem, block_bytes):
    # Double-buffered blocks + headroom; floored/capped so it is valid on
    # v5e/v6e (128 MiB VMEM) and v7x (64 MiB VMEM).
    vmem = int(min(max(2 * block_bytes + (4 << 20), 16 << 20), 56 << 20))
    return pltpu.CompilerParams(dimension_semantics=sem, vmem_limit_bytes=vmem)


def _pick_tm(m):
    """Row-tile for the pointwise matmuls: multiple of 8, <=512, >=2 grid steps."""
    if m % 8 != 0:
        return m                       # single full block (toy/edge sizes)
    tm = min(512, m)
    if tm == m and m >= 16:
        tm = max(8, (m // 2) // 8 * 8)  # guarantee at least 2 grid steps
    return tm


def _pick_th(ho, wo):
    """Output-row strip height for the 3x3 conv (must divide Ho; lane-friendly)."""
    for th in (16, 14, 8, 7, 4, 2, 1):
        if ho % th == 0 and ((th * wo) % 8 == 0 or th == ho):
            return th
    return ho


# --------------------------------------------------------------------------
# Pallas wrappers
# --------------------------------------------------------------------------
def _rows_call(kernel_fn, args, *, m, cout, out_dtype):
    """Run a pointwise kernel tiled over rows.  args = [(array, tiled_over_rows)]."""
    tm = _pick_tm(m)
    grid = (pl.cdiv(m, tm),)
    inputs, in_specs = [], []
    block_bytes = tm * cout * jnp.dtype(out_dtype).itemsize
    for a, tiled in args:
        inputs.append(a)
        if tiled:
            in_specs.append(pl.BlockSpec((tm, a.shape[1]), lambda i: (i, 0)))
            block_bytes += tm * a.shape[1] * a.dtype.itemsize
        else:
            in_specs.append(
                pl.BlockSpec(a.shape, lambda i, nd=a.ndim: (0,) * nd))
            block_bytes += a.size * a.dtype.itemsize
    # NOTE: for production channel counts (256..2048) cout is a multiple of 128
    # (lane-dense stores); toy sizes below 128 fall back to masked stores.
    return pl.pallas_call(
        kernel_fn,
        out_shape=jax.ShapeDtypeStruct((m, cout), out_dtype),
        grid=grid,
        in_specs=in_specs,
        out_specs=pl.BlockSpec((tm, cout), lambda i: (i, 0)),
        compiler_params=_compiler_params(("parallel",), block_bytes),
    )(*inputs)


def _conv3x3_bn_relu(x_nhwc, w2, scale, bias, *, stride, compute_dtype):
    """3x3 conv + BN + ReLU.  Returns (N, Ho*Wo, Cout) in compute_dtype."""
    n, h, w, cin = x_nhwc.shape
    cout = w2.shape[-1]
    ho = (h + 2 - 3) // stride + 1
    wo = (w + 2 - 3) // stride + 1
    hp = h + 2
    xp = jnp.pad(x_nhwc, ((0, 0), (1, 1), (1, 1), (0, 0)))          # pad=1
    th = _pick_th(ho, wo)
    n_strips = ho // th

    # weights: (3,3,Cin,Cout) -> (3, 3*Cin, Cout), K ordered (kw, cin)
    w9 = w2.reshape(3, 3 * cin, cout).astype(compute_dtype)

    if stride == 1:
        xin = xp.astype(compute_dtype)                  # (N, Hp, Wp, Cin)
        in_block = (1, hp, w + 2, cin)
        x_map = lambda b, j: (b, 0, 0, 0)
    else:
        # width decimation done once in the wrapper (contiguous in-kernel reads)
        xin = jnp.stack(
            [xp[:, :, kw:kw + (wo - 1) * stride + 1:stride, :] for kw in range(3)],
            axis=2).astype(compute_dtype)               # (N, Hp, 3, Wo, Cin)
        in_block = (1, hp, 3, wo, cin)
        x_map = lambda b, j: (b, 0, 0, 0, 0)

    esz = jnp.dtype(compute_dtype).itemsize
    block_bytes = (int(np.prod(in_block)) * esz
                   + 9 * cin * cout * esz
                   + th * wo * cout * esz
                   + 2 * cout * 4)

    kernel = functools.partial(_conv3x3_bn_relu_kernel, stride=stride,
                               th=th, wo=wo, cin=cin, cout=cout)
    out = pl.pallas_call(
        kernel,
        out_shape=jax.ShapeDtypeStruct((n, ho * wo, cout), compute_dtype),
        grid=(n, n_strips),
        in_specs=[
            pl.BlockSpec(in_block, x_map),
            pl.BlockSpec((3, 3 * cin, cout), lambda b, j: (0, 0, 0)),
            pl.BlockSpec((1, cout), lambda b, j: (0, 0)),
            pl.BlockSpec((1, cout), lambda b, j: (0, 0)),
        ],
        out_specs=pl.BlockSpec((1, th * wo, cout), lambda b, j: (b, j, 0)),
        compiler_params=_compiler_params(("parallel", "parallel"), block_bytes),
    )(xin, w9, scale.reshape(1, cout), bias.reshape(1, cout))
    return out


# --------------------------------------------------------------------------
# Bottleneck forward (Pallas) and parameter init
# --------------------------------------------------------------------------
EXPANSION = 4


def _make_bn(key, c, eps=1e-5):
    k1, k2, k3, k4 = jax.random.split(key, 4)
    gamma = 1.0 + 0.1 * jax.random.normal(k1, (c,), jnp.float32)
    beta = 0.1 * jax.random.normal(k2, (c,), jnp.float32)
    mean = 0.1 * jax.random.normal(k3, (c,), jnp.float32)
    var = jnp.abs(jax.random.normal(k4, (c,), jnp.float32)) + 0.5
    scale = gamma / jnp.sqrt(var + eps)
    bias = beta - mean * scale
    return scale, bias


def init_bottleneck_params(key, inplanes, planes, stride):
    outp = EXPANSION * planes
    ks = jax.random.split(key, 8)
    p = {
        "w1": 0.1 * jax.random.normal(ks[0], (inplanes, planes), jnp.float32),
        "bn1": _make_bn(ks[1], planes),
        "w2": 0.1 * jax.random.normal(ks[2], (3, 3, planes, planes), jnp.float32),
        "bn2": _make_bn(ks[3], planes),
        "w3": 0.1 * jax.random.normal(ks[4], (planes, outp), jnp.float32),
        "bn3": _make_bn(ks[5], outp),
    }
    if stride != 1 or inplanes != outp:
        p["ws"] = 0.1 * jax.random.normal(ks[6], (inplanes, outp), jnp.float32)
        p["bns"] = _make_bn(ks[7], outp)
    return p


def bottleneck_forward(x_nchw, params, stride, compute_dtype=jnp.float32):
    n, cin, h, w = x_nchw.shape
    planes = params["w1"].shape[1]
    outp = params["w3"].shape[1]
    x = jnp.transpose(x_nchw, (0, 2, 3, 1))                       # NCHW -> NHWC
    x_cd = x.astype(compute_dtype)

    # conv1 (1x1) + bn1 + relu -- row-tiled matmul
    m1 = n * h * w
    s1, b1 = params["bn1"]
    out1 = _rows_call(
        functools.partial(_pw_bn_kernel, relu=True),
        [(x_cd.reshape(m1, cin), True),
         (params["w1"].astype(compute_dtype), False),
         (s1.reshape(1, planes), False),
         (b1.reshape(1, planes), False)],
        m=m1, cout=planes, out_dtype=compute_dtype)
    out1 = out1.reshape(n, h, w, planes)

    # conv2 (3x3, stride, pad=1) + bn2 + relu -- row-strip kernel
    s2, b2 = params["bn2"]
    out2 = _conv3x3_bn_relu(out1, params["w2"], s2, b2,
                            stride=stride, compute_dtype=compute_dtype)
    ho = (h + 2 - 3) // stride + 1
    wo = (w + 2 - 3) // stride + 1
    m3 = n * ho * wo
    out2_2d = out2.reshape(m3, planes)

    s3, b3 = params["bn3"]
    if "ws" in params:
        # projection shortcut fused into the final kernel (one fewer HBM trip)
        xs = x_cd if stride == 1 else x_cd[:, ::stride, ::stride, :]
        ss, bs = params["bns"]
        out3 = _rows_call(
            _pw_bn_proj_add_relu_kernel,
            [(out2_2d, True),
             (params["w3"].astype(compute_dtype), False),
             (s3.reshape(1, outp), False),
             (b3.reshape(1, outp), False),
             (xs.reshape(m3, cin), True),
             (params["ws"].astype(compute_dtype), False),
             (ss.reshape(1, outp), False),
             (bs.reshape(1, outp), False)],
            m=m3, cout=outp, out_dtype=compute_dtype)
    else:
        assert stride == 1 and cin == outp, (
            "identity shortcut requires stride == 1 and inplanes == 4*planes")
        out3 = _rows_call(
            _pw_bn_add_relu_kernel,
            [(out2_2d, True),
             (params["w3"].astype(compute_dtype), False),
             (s3.reshape(1, outp), False),
             (b3.reshape(1, outp), False),
             (x_cd.reshape(m3, outp), True)],
            m=m3, cout=outp, out_dtype=compute_dtype)

    out3 = out3.reshape(n, ho, wo, outp).astype(jnp.float32)
    return jnp.transpose(out3, (0, 3, 1, 2))                      # NHWC -> NCHW


# --------------------------------------------------------------------------
# Pure-JAX reference (for correctness check)
# --------------------------------------------------------------------------
def bottleneck_reference(x_nchw, params, stride):
    def conv1x1(x, wmat, s):
        wk = jnp.transpose(wmat)[:, :, None, None]                # (Cout,Cin,1,1)
        return lax.conv_general_dilated(
            x, wk, (s, s), "VALID", dimension_numbers=("NCHW", "OIHW", "NCHW"))

    def conv3x3(x, w4, s):
        wk = jnp.transpose(w4, (3, 2, 0, 1))                      # (Cout,Cin,3,3)
        return lax.conv_general_dilated(
            x, wk, (s, s), ((1, 1), (1, 1)),
            dimension_numbers=("NCHW", "OIHW", "NCHW"))

    def bn(x, sb):
        sc, bi = sb
        return x * sc[None, :, None, None] + bi[None, :, None, None]

    out = jax.nn.relu(bn(conv1x1(x_nchw, params["w1"], 1), params["bn1"]))
    out = jax.nn.relu(bn(conv3x3(out, params["w2"], stride), params["bn2"]))
    out = bn(conv1x1(out, params["w3"], 1), params["bn3"])
    if "ws" in params:
        short = bn(conv1x1(x_nchw, params["ws"], stride), params["bns"])
    else:
        short = x_nchw[:, :, ::stride, ::stride]
    return jax.nn.relu(out + short)


# --------------------------------------------------------------------------
if __name__ == "__main__":
    key = jax.random.PRNGKey(0)

    configs = [
        # (name, N, inplanes, H, W, planes, stride)
        ("projection shortcut, stride=1", 2, 8, 16, 16, 4, 1),
        ("identity shortcut,  stride=1", 2, 16, 16, 16, 4, 1),
        ("projection shortcut, stride=2", 2, 8, 16, 16, 4, 2),
    ]

    for name, n, inplanes, h, w, planes, stride in configs:
        key, kx, kp = jax.random.split(key, 3)
        x = jax.random.normal(kx, (n, inplanes, h, w), jnp.float32)
        params = init_bottleneck_params(kp, inplanes, planes, stride)

        out = jax.block_until_ready(bottleneck_forward(x, params, stride))
        ref = jax.block_until_ready(bottleneck_reference(x, params, stride))
        np.testing.assert_allclose(np.asarray(out), np.asarray(ref),
                                   rtol=1e-4, atol=1e-4)

    # bf16 activations/weights with f32 accumulation (MXU-native path); compared
    # against the f32 reference with a correspondingly loose tolerance.
    name, n, inplanes, h, w, planes, stride = configs[0]
    key, kx, kp = jax.random.split(key, 3)
    x = jax.random.normal(kx, (n, inplanes, h, w), jnp.float32)
    params = init_bottleneck_params(kp, inplanes, planes, stride)
    out_bf16 = jax.block_until_ready(
        bottleneck_forward(x, params, stride, compute_dtype=jnp.bfloat16))
    ref = jax.block_until_ready(bottleneck_reference(x, params, stride))
    np.testing.assert_allclose(np.asarray(out_bf16), np.asarray(ref),
                               rtol=1e-1, atol=1e-1)

    print("KERNEL_OK")
</pallas_src>

<mosaic_0001>
module attributes {stable_mosaic.version = 11 : i64} {
  func.func @_pw_bn_kernel(%arg0: i32, %arg1: memref<256x8xf32, #tpu.memory_space<vmem>>, %arg2: memref<8x4xf32, #tpu.memory_space<vmem>>, %arg3: memref<1x4xf32, #tpu.memory_space<vmem>>, %arg4: memref<1x4xf32, #tpu.memory_space<vmem>>, %arg5: memref<256x4xf32, #tpu.memory_space<vmem>>) attributes {dimension_semantics = [#tpu.dimension_semantics<parallel>], iteration_bounds = array<i64: 2>, scalar_prefetch = 0 : i64, scratch_operands = 0 : i64, tpu.core_type = #tpu.core_type<tc>, window_params = [{transform_indices = @transform_0, window_bounds = array<i64: 256, 8>}, {pipeline_mode = #tpu.pipeline_mode<synchronous>, transform_indices = @transform_1, window_bounds = array<i64: 8, 4>}, {pipeline_mode = #tpu.pipeline_mode<synchronous>, transform_indices = @transform_2, window_bounds = array<i64: 1, 4>}, {pipeline_mode = #tpu.pipeline_mode<synchronous>, transform_indices = @transform_3, window_bounds = array<i64: 1, 4>}, {transform_indices = @transform_4, window_bounds = array<i64: 256, 4>}]} {
    %c0 = arith.constant 0 : index
    %c0_0 = arith.constant 0 : index
    %0 = vector.load %arg1[%c0, %c0_0] : memref<256x8xf32, #tpu.memory_space<vmem>>, vector<256x8xf32>
    %c0_1 = arith.constant 0 : index
    %c0_2 = arith.constant 0 : index
    %1 = vector.load %arg2[%c0_1, %c0_2] : memref<8x4xf32, #tpu.memory_space<vmem>>, vector<8x4xf32>
    %cst = arith.constant dense<0.000000e+00> : vector<256x4xf32>
    %2 = tpu.matmul %0, %1, %cst {dimension_numbers = #tpu.dot_dimension_numbers<[1], [0], [0], [1], [0, 0, 1, 1], [], []>} : vector<256x8xf32>, vector<8x4xf32>, vector<256x4xf32> -> vector<256x4xf32>
    %c0_3 = arith.constant 0 : index
    %c0_4 = arith.constant 0 : index
    %3 = vector.load %arg3[%c0_3, %c0_4] : memref<1x4xf32, #tpu.memory_space<vmem>>, vector<1x4xf32>
    %4 = vector.broadcast %3 : vector<1x4xf32> to vector<256x4xf32>
    %5 = arith.mulf %2, %4 : vector<256x4xf32>
    %c0_5 = arith.constant 0 : index
    %c0_6 = arith.constant 0 : index
    %6 = vector.load %arg4[%c0_5, %c0_6] : memref<1x4xf32, #tpu.memory_space<vmem>>, vector<1x4xf32>
    %7 = vector.broadcast %6 : vector<1x4xf32> to vector<256x4xf32>
    %8 = arith.addf %5, %7 : vector<256x4xf32>
    %cst_7 = arith.constant 0.000000e+00 : f32
    %9 = vector.broadcast %cst_7 : f32 to vector<256x4xf32>
    %10 = arith.maximumf %8, %9 : vector<256x4xf32>
    %c0_8 = arith.constant 0 : index
    %c0_9 = arith.constant 0 : index
    %11 = vector.load %arg5[%c0_8, %c0_9] : memref<256x4xf32, #tpu.memory_space<vmem>>, vector<256x4xf32>
    tpu.vector_store %arg5[%c0_8, %c0_9], %10 {strides = array<i32>} : memref<256x4xf32, #tpu.memory_space<vmem>>, vector<256x4xf32>,
    return
  }
  func.func @transform_0(%arg0: i32) -> (i32, i32) {
    %c0_i32 = arith.constant 0 : i32
    %c0_i32_0 = arith.constant 0 : i32
    return %arg0, %c0_i32 : i32, i32
  }
  func.func @transform_1(%arg0: i32) -> (i32, i32) {
    %c0_i32 = arith.constant 0 : i32
    %c0_i32_0 = arith.constant 0 : i32
    %c0_i32_1 = arith.constant 0 : i32
    return %c0_i32, %c0_i32_0 : i32, i32
  }
  func.func @transform_2(%arg0: i32) -> (i32, i32) {
    %c0_i32 = arith.constant 0 : i32
    %c0_i32_0 = arith.constant 0 : i32
    %c0_i32_1 = arith.constant 0 : i32
    return %c0_i32, %c0_i32_0 : i32, i32
  }
  func.func @transform_3(%arg0: i32) -> (i32, i32) {
    %c0_i32 = arith.constant 0 : i32
    %c0_i32_0 = arith.constant 0 : i32
    %c0_i32_1 = arith.constant 0 : i32
    return %c0_i32, %c0_i32_0 : i32, i32
  }
  func.func @transform_4(%arg0: i32) -> (i32, i32) {
    %c0_i32 = arith.constant 0 : i32
    %c0_i32_0 = arith.constant 0 : i32
    return %arg0, %c0_i32 : i32, i32
  }
}

</mosaic_0001>

<bundles_post_ra>
// kernel: tpu_custom_call.1
= control target key start
LH: loop header
LB: loop body
LE: loop exit
PB: predicated region body
PF: predicated region fallthrough
CT: control target
= control target key end

     0   :  { %s926_s15 = smov 0   ;;  %s1159_s0 = inlined_call_operand.vmem [shape: f32[512,8], index: 0, kind: input, shape index: {}]   ;;  %s1160_s1 = inlined_call_operand.vmem [shape: f32[8,4], index: 1, kind: input, shape index: {}]   ;;  %s1161_s2 = inlined_call_operand.vmem [shape: f32[1,4], index: 2, kind: input, shape index: {}]   ;;  %s1162_s3 = inlined_call_operand.vmem [shape: f32[1,4], index: 3, kind: input, shape index: {}]   ;;  %s1163_s4 = inlined_call_operand.vmem [shape: f32[512,4], index: 4, kind: output, shape index: {}]  }
   0x1 LB: > { %s755_s16 = sadd.s32 4294967295, %s899_s15   ;;  %p759_p0 = scmp.ge.s32.totalorder %s899_s15, 1  ;;  %s899_s15 = sphi %s926_s15, %s14_s15  }
   0x2   : > { %p163_p1 = scmp.lt.s32.totalorder %s899_s15, 3 }
   0x4   : > { %p164_p2 = pnand %p759_p0, %p163_p1 }
   0x5   : > { %v233_v0 = vld [vmem:[%s1160_s1] sm:$0xff] (!%p164_p2)  ;;  %s760_s19 = sshll.u32 (!%p164_p2), %s755_s16, 5  ;;  %vm234_vm0 = vcmask (!%p164_p2), 64512   ;;  %vm666_vm1 = vcmask (!%p164_p2), 31744  }
   0x6   : > { %167 = sbr.rel (%p164_p2) target bundleno = 267 (0x10b), region = 36  ;;  %833 = vmatprep.subr.mxu0 (!%p164_p2), %v233_v0  ;;  %883 = vmatprep.subr.mxu1 (!%p164_p2), %v233_v0  ;;  %p190_p3 = scmp.lt.s32.totalorder (!%p164_p2), %s760_s19, 63  ;;  %v1014_v33 = vld [vmem:[%s1161_s2] ss:$0 sm:$0xff] (!%p164_p2) }
   0x7   : > { %834 = vmatpush3.msra.mxu0 (!%p164_p2), %v233_v0  ;;  %884 = vmatpush3.msra.mxu1 (!%p164_p2), %v233_v0  ;;  %v1019_v35 = vld [vmem:[%s1162_s3] ss:$0 sm:$0xff] (!%p164_p2) }
   0xd   : > { %s1165_s19 = smov (!%p190_p3, %s760_s19), 63 }
   0xe   : > { %s761_s20 = sshll.u32 %s1165_s19, 3 }
   0xf   : > { %s945_s23 = scalar_lea.vmem %s1159_s0, %s761_s20  ;;  %s1032_s30 = scalar_lea.vmem %s1163_s4, %s761_s20 }
  0x10   : > { %v201_v1 = vld [vmem:[%s945_s23] sm:$0xff]  ;;  %v202_v3 = vld [vmem:[%s945_s23 + $0x8] sm:$0xff]  ;;  %v203_v5 = vld [vmem:[%s945_s23 + $0x10] sm:$0xff] }
  0x11   : > { %v217_v2 = vld [vmem:[%s945_s23 + $0x80] sm:$0xff]  ;;  %835 = vmatprep.mubr.msk.f32.mxu0 %vm234_vm0, %v201_v1  ;;  %v218_v4 = vld [vmem:[%s945_s23 + $0x88] sm:$0xff]  ;;  %v219_v6 = vld [vmem:[%s945_s23 + $0x90] sm:$0xff] }
  0x12   : > { %859 = vmatprep.mubr.msk.f32.mxu1 %vm234_vm0, %v217_v2  ;;  %836 = vmatmul.mubr.msk.f32.vlgmr.msra.gmra.mrb[0].mxu0 %vm234_vm0, %v202_v3  ;;  %v204_v7 = vld [vmem:[%s945_s23 + $0x18] sm:$0xff]  ;;  %v205_v9 = vld [vmem:[%s945_s23 + $0x20] sm:$0xff]  ;;  %v206_v11 = vld [vmem:[%s945_s23 + $0x28] sm:$0xff] }
  0x13   : > { %860 = vmatmul.mubr.msk.f32.vlgmr.msra.gmra.mrb[0].mxu1 %vm234_vm0, %v218_v4  ;;  %838 = vmatprep.mubr.msk.f32.mxu0 %vm234_vm0, %v203_v5  ;;  %v220_v8 = vld [vmem:[%s945_s23 + $0x98] sm:$0xff]  ;;  %v221_v10 = vld [vmem:[%s945_s23 + $0xa0] sm:$0xff]  ;;  %v222_v12 = vld [vmem:[%s945_s23 + $0xa8] sm:$0xff] }
  0x14   : > { %862 = vmatprep.mubr.msk.f32.mxu1 %vm234_vm0, %v219_v6  ;;  %v207_v13 = vld [vmem:[%s945_s23 + $0x30] sm:$0xff]  ;;  %v208_v15 = vld [vmem:[%s945_s23 + $0x38] sm:$0xff]  ;;  %v209_v17 = vld [vmem:[%s945_s23 + $0x40] sm:$0xff] }
  0x15   : > { %v223_v14 = vld [vmem:[%s945_s23 + $0xb0] sm:$0xff]  ;;  %v224_v16 = vld [vmem:[%s945_s23 + $0xb8] sm:$0xff]  ;;  %v225_v18 = vld [vmem:[%s945_s23 + $0xc0] sm:$0xff] }
  0x16   : > { %839 = vmatmul.mubr.msk.f32.gmra.mrb[2].mxu0 %vm234_vm0, %v204_v7  ;;  %v210_v19 = vld [vmem:[%s945_s23 + $0x48] sm:$0xff]  ;;  %v211_v21 = vld [vmem:[%s945_s23 + $0x50] sm:$0xff]  ;;  %v212_v23 = vld [vmem:[%s945_s23 + $0x58] sm:$0xff] }
  0x17   : > { %863 = vmatmul.mubr.msk.f32.gmra.mrb[2].mxu1 %vm234_vm0, %v220_v8  ;;  %841 = vmatprep.mubr.msk.f32.mxu0 %vm234_vm0, %v205_v9  ;;  %v226_v20 = vld [vmem:[%s945_s23 + $0xc8] sm:$0xff]  ;;  %v227_v22 = vld [vmem:[%s945_s23 + $0xd0] sm:$0xff]  ;;  %v228_v24 = vld [vmem:[%s945_s23 + $0xd8] sm:$0xff] }
  0x18   : > { %865 = vmatprep.mubr.msk.f32.mxu1 %vm234_vm0, %v221_v10  ;;  %v213_v25 = vld [vmem:[%s945_s23 + $0x60] sm:$0xff]  ;;  %v214_v27 = vld [vmem:[%s945_s23 + $0x68] sm:$0xff]  ;;  %v215_v29 = vld [vmem:[%s945_s23 + $0x70] sm:$0xff] }
  0x19   : > { %v229_v26 = vld [vmem:[%s945_s23 + $0xe0] sm:$0xff]  ;;  %v230_v28 = vld [vmem:[%s945_s23 + $0xe8] sm:$0xff]  ;;  %v231_v30 = vld [vmem:[%s945_s23 + $0xf0] sm:$0xff] }
  0x1a   : > { %842 = vmatmul.mubr.msk.f32.gmra.mrb[4].mxu0 %vm234_vm0, %v206_v11  ;;  %v216_v31 = vld [vmem:[%s945_s23 + $0x78] sm:$0xff] }
  0x1b   : > { %866 = vmatmul.mubr.msk.f32.gmra.mrb[4].mxu1 %vm234_vm0, %v222_v12  ;;  %844 = vmatprep.mubr.msk.f32.mxu0 %vm234_vm0, %v207_v13  ;;  %v232_v32 = vld [vmem:[%s945_s23 + $0xf8] sm:$0xff] }
  0x1c   : > { %868 = vmatprep.mubr.msk.f32.mxu1 %vm234_vm0, %v223_v14 }
  0x1e   : > { %845 = vmatmul.mubr.msk.f32.gmra.mrb[6].mxu0 %vm234_vm0, %v208_v15 }
  0x1f   : > { %869 = vmatmul.mubr.msk.f32.gmra.mrb[6].mxu1 %vm234_vm0, %v224_v16  ;;  %847 = vmatprep.mubr.msk.f32.mxu0 %vm234_vm0, %v209_v17 }
  0x20   : > { %871 = vmatprep.mubr.msk.f32.mxu1 %vm234_vm0, %v225_v18 }
  0x22   : > { %848 = vmatmul.mubr.msk.f32.gmra.mrb[8].mxu0 %vm234_vm0, %v210_v19 }
  0x23   : > { %872 = vmatmul.mubr.msk.f32.gmra.mrb[8].mxu1 %vm234_vm0, %v226_v20  ;;  %850 = vmatprep.mubr.msk.f32.mxu0 %vm234_vm0, %v211_v21 }
  0x24   : > { %874 = vmatprep.mubr.msk.f32.mxu1 %vm234_vm0, %v227_v22 }
  0x26   : > { %851 = vmatmul.mubr.msk.f32.gmra.mrb[10].mxu0 %vm234_vm0, %v212_v23 }
  0x27   : > { %875 = vmatmul.mubr.msk.f32.gmra.mrb[10].mxu1 %vm234_vm0, %v228_v24  ;;  %853 = vmatprep.mubr.msk.f32.mxu0 %vm234_vm0, %v213_v25 }
  0x28   : > { %877 = vmatprep.mubr.msk.f32.mxu1 %vm234_vm0, %v229_v26 }
  0x2a   : > { %854 = vmatmul.mubr.msk.f32.gmra.mrb[12].mxu0 %vm234_vm0, %v214_v27 }
  0x2b   : > { %878 = vmatmul.mubr.msk.f32.gmra.mrb[12].mxu1 %vm234_vm0, %v230_v28  ;;  %856 = vmatprep.mubr.msk.f32.mxu0 %vm234_vm0, %v215_v29 }
  0x2c   : > { %880 = vmatprep.mubr.msk.f32.mxu1 %vm234_vm0, %v231_v30 }
  0x2e   : > { %857 = vmatmul.mubr.msk.f32.gmra.mrb[14].mxu0 %vm234_vm0, %v216_v31 }
  0x2f   : > { %881 = vmatmul.mubr.msk.f32.gmra.mrb[14].mxu1 %vm234_vm0, %v232_v32 }
  0xe5   : > { %v837_v34 = vpop.f32.mrb[0].mxu0 }
  0xe6   : > { %v861_v36 = vpop.f32.mrb[0].mxu1  ;;  %v564_v37 = vmul.f32 %v837_v34, %v1014_v33  ;;  %v397_v39 = vpop.f32.mrb[1].mxu0 }
  0xe7   : > { %v580_v38 = vmul.f32 %v861_v36, %v1014_v33  ;;  %v477_v40 = vpop.f32.mrb[1].mxu1  ;;  %v563_v41 = vmul.f32 %v1014_v33, %v397_v39 }
  0xe8   : > { %v579_v42 = vmul.f32 %v1014_v33, %v477_v40  ;;  %v603_v43 = vadd.f32 %v1019_v35, %v564_v37 }
  0xe9   : > { %v619_v44 = vadd.f32 %v1019_v35, %v580_v38  ;;  %v602_v45 = vadd.f32 %v1019_v35, %v563_v41  ;;  %v840_v47 = vpop.f32.mrb[2].mxu0 }
  0xea   : > { %v618_v46 = vadd.f32 %v1019_v35, %v579_v42  ;;  %v864_v48 = vpop.f32.mrb[2].mxu1  ;;  %v635_v49 = vmax.f32 %v603_v43, 0.0  ;;  %v566_v51 = vmul.f32 %v840_v47, %v1014_v33  ;;  %v407_v53 = vpop.f32.mrb[3].mxu0 }
  0xeb   : > { %v651_v50 = vmax.f32 %v619_v44, 0.0  ;;  %v582_v52 = vmul.f32 %v864_v48, %v1014_v33  ;;  %v487_v54 = vpop.f32.mrb[3].mxu1  ;;  %v634_v55 = vmax.f32 %v602_v45, 0.0  ;;  %v565_v57 = vmul.f32 %v1014_v33, %v407_v53 }
  0xec   : > { %v650_v56 = vmax.f32 %v618_v46, 0.0  ;;  %v581_v58 = vmul.f32 %v1014_v33, %v487_v54  ;;  %668 = vst.msk [vmem:[%s1032_s30 + $0x8] sm:$0xff] %vm666_vm1, %v635_v49  ;;  %v605_v59 = vadd.f32 %v1019_v35, %v566_v51 }
  0xed   : > { %684 = vst.msk [vmem:[%s1032_s30 + $0x88] sm:$0xff] %vm666_vm1, %v651_v50  ;;  %v621_v60 = vadd.f32 %v1019_v35, %v582_v52  ;;  %667 = vst.msk [vmem:[%s1032_s30] sm:$0xff] %vm666_vm1, %v634_v55  ;;  %v604_v61 = vadd.f32 %v1019_v35, %v565_v57  ;;  %v843_v63 = vpop.f32.mrb[4].mxu0 }
  0xee   : > { %683 = vst.msk [vmem:[%s1032_s30 + $0x80] sm:$0xff] %vm666_vm1, %v650_v56  ;;  %v620_v62 = vadd.f32 %v1019_v35, %v581_v58  ;;  %v867_v0 = vpop.f32.mrb[4].mxu1  ;;  %v637_v1 = vmax.f32 %v605_v59, 0.0  ;;  %v568_v3 = vmul.f32 %v843_v63, %v1014_v33  ;;  %v417_v5 = vpop.f32.mrb[5].mxu0 }
  0xef   : > { %v653_v2 = vmax.f32 %v621_v60, 0.0  ;;  %v584_v4 = vmul.f32 %v867_v0, %v1014_v33  ;;  %v497_v6 = vpop.f32.mrb[5].mxu1  ;;  %v636_v7 = vmax.f32 %v604_v61, 0.0  ;;  %v567_v9 = vmul.f32 %v1014_v33, %v417_v5 }
  0xf0   : > { %v652_v8 = vmax.f32 %v620_v62, 0.0  ;;  %v583_v10 = vmul.f32 %v1014_v33, %v497_v6  ;;  %670 = vst.msk [vmem:[%s1032_s30 + $0x18] sm:$0xff] %vm666_vm1, %v637_v1  ;;  %v607_v11 = vadd.f32 %v1019_v35, %v568_v3 }
  0xf1   : > { %686 = vst.msk [vmem:[%s1032_s30 + $0x98] sm:$0xff] %vm666_vm1, %v653_v2  ;;  %v623_v12 = vadd.f32 %v1019_v35, %v584_v4  ;;  %669 = vst.msk [vmem:[%s1032_s30 + $0x10] sm:$0xff] %vm666_vm1, %v636_v7  ;;  %v606_v13 = vadd.f32 %v1019_v35, %v567_v9  ;;  %v846_v15 = vpop.f32.mrb[6].mxu0 }
  0xf2   : > { %685 = vst.msk [vmem:[%s1032_s30 + $0x90] sm:$0xff] %vm666_vm1, %v652_v8  ;;  %v622_v14 = vadd.f32 %v1019_v35, %v583_v10  ;;  %v870_v16 = vpop.f32.mrb[6].mxu1  ;;  %v639_v17 = vmax.f32 %v607_v11, 0.0  ;;  %v570_v19 = vmul.f32 %v846_v15, %v1014_v33  ;;  %v427_v21 = vpop.f32.mrb[7].mxu0 }
  0xf3   : > { %v655_v18 = vmax.f32 %v623_v12, 0.0  ;;  %v586_v20 = vmul.f32 %v870_v16, %v1014_v33  ;;  %v507_v22 = vpop.f32.mrb[7].mxu1  ;;  %v638_v23 = vmax.f32 %v606_v13, 0.0  ;;  %v569_v25 = vmul.f32 %v1014_v33, %v427_v21 }
  0xf4   : > { %v654_v24 = vmax.f32 %v622_v14, 0.0  ;;  %v585_v26 = vmul.f32 %v1014_v33, %v507_v22  ;;  %672 = vst.msk [vmem:[%s1032_s30 + $0x28] sm:$0xff] %vm666_vm1, %v639_v17  ;;  %v609_v27 = vadd.f32 %v1019_v35, %v570_v19 }
  0xf5   : > { %688 = vst.msk [vmem:[%s1032_s30 + $0xa8] sm:$0xff] %vm666_vm1, %v655_v18  ;;  %v625_v28 = vadd.f32 %v1019_v35, %v586_v20  ;;  %671 = vst.msk [vmem:[%s1032_s30 + $0x20] sm:$0xff] %vm666_vm1, %v638_v23  ;;  %v608_v29 = vadd.f32 %v1019_v35, %v569_v25  ;;  %v849_v31 = vpop.f32.mrb[8].mxu0 }
  0xf6   : > { %687 = vst.msk [vmem:[%s1032_s30 + $0xa0] sm:$0xff] %vm666_vm1, %v654_v24  ;;  %v624_v30 = vadd.f32 %v1019_v35, %v585_v26  ;;  %v873_v32 = vpop.f32.mrb[8].mxu1  ;;  %v641_v34 = vmax.f32 %v609_v27, 0.0  ;;  %v572_v37 = vmul.f32 %v849_v31, %v1014_v33  ;;  %v437_v39 = vpop.f32.mrb[9].mxu0 }
  0xf7   : > { %v657_v36 = vmax.f32 %v625_v28, 0.0  ;;  %v588_v38 = vmul.f32 %v873_v32, %v1014_v33  ;;  %v517_v40 = vpop.f32.mrb[9].mxu1  ;;  %v640_v41 = vmax.f32 %v608_v29, 0.0  ;;  %v571_v43 = vmul.f32 %v1014_v33, %v437_v39 }
  0xf8   : > { %v656_v42 = vmax.f32 %v624_v30, 0.0  ;;  %v587_v44 = vmul.f32 %v1014_v33, %v517_v40  ;;  %674 = vst.msk [vmem:[%s1032_s30 + $0x38] sm:$0xff] %vm666_vm1, %v641_v34  ;;  %v611_v45 = vadd.f32 %v1019_v35, %v572_v37 }
  0xf9   : > { %690 = vst.msk [vmem:[%s1032_s30 + $0xb8] sm:$0xff] %vm666_vm1, %v657_v36  ;;  %v627_v46 = vadd.f32 %v1019_v35, %v588_v38  ;;  %673 = vst.msk [vmem:[%s1032_s30 + $0x30] sm:$0xff] %vm666_vm1, %v640_v41  ;;  %v610_v47 = vadd.f32 %v1019_v35, %v571_v43  ;;  %v852_v49 = vpop.f32.mrb[10].mxu0 }
  0xfa   : > { %689 = vst.msk [vmem:[%s1032_s30 + $0xb0] sm:$0xff] %vm666_vm1, %v656_v42  ;;  %v626_v48 = vadd.f32 %v1019_v35, %v587_v44  ;;  %v876_v50 = vpop.f32.mrb[10].mxu1  ;;  %v643_v51 = vmax.f32 %v611_v45, 0.0  ;;  %v574_v53 = vmul.f32 %v852_v49, %v1014_v33  ;;  %v447_v55 = vpop.f32.mrb[11].mxu0 }
  0xfb   : > { %v659_v52 = vmax.f32 %v627_v46, 0.0  ;;  %v590_v54 = vmul.f32 %v876_v50, %v1014_v33  ;;  %v527_v56 = vpop.f32.mrb[11].mxu1  ;;  %v642_v57 = vmax.f32 %v610_v47, 0.0  ;;  %v573_v59 = vmul.f32 %v1014_v33, %v447_v55 }
  0xfc   : > { %v658_v58 = vmax.f32 %v626_v48, 0.0  ;;  %v589_v60 = vmul.f32 %v1014_v33, %v527_v56  ;;  %676 = vst.msk [vmem:[%s1032_s30 + $0x48] sm:$0xff] %vm666_vm1, %v643_v51  ;;  %v613_v61 = vadd.f32 %v1019_v35, %v574_v53 }
  0xfd   : > { %692 = vst.msk [vmem:[%s1032_s30 + $0xc8] sm:$0xff] %vm666_vm1, %v659_v52  ;;  %v629_v62 = vadd.f32 %v1019_v35, %v590_v54  ;;  %675 = vst.msk [vmem:[%s1032_s30 + $0x40] sm:$0xff] %vm666_vm1, %v642_v57  ;;  %v612_v63 = vadd.f32 %v1019_v35, %v573_v59  ;;  %v855_v1 = vpop.f32.mrb[12].mxu0 }
  0xfe   : > { %691 = vst.msk [vmem:[%s1032_s30 + $0xc0] sm:$0xff] %vm666_vm1, %v658_v58  ;;  %v628_v0 = vadd.f32 %v1019_v35, %v589_v60  ;;  %v879_v2 = vpop.f32.mrb[12].mxu1  ;;  %v645_v3 = vmax.f32 %v613_v61, 0.0  ;;  %v576_v5 = vmul.f32 %v855_v1, %v1014_v33  ;;  %v457_v7 = vpop.f32.mrb[13].mxu0 }
  0xff   : > { %v661_v4 = vmax.f32 %v629_v62, 0.0  ;;  %v592_v6 = vmul.f32 %v879_v2, %v1014_v33  ;;  %v537_v8 = vpop.f32.mrb[13].mxu1  ;;  %v644_v9 = vmax.f32 %v612_v63, 0.0  ;;  %v575_v11 = vmul.f32 %v1014_v33, %v457_v7 }
 0x100   : > { %v660_v10 = vmax.f32 %v628_v0, 0.0  ;;  %v591_v12 = vmul.f32 %v1014_v33, %v537_v8  ;;  %678 = vst.msk [vmem:[%s1032_s30 + $0x58] sm:$0xff] %vm666_vm1, %v645_v3  ;;  %v615_v13 = vadd.f32 %v1019_v35, %v576_v5 }
 0x101   : > { %694 = vst.msk [vmem:[%s1032_s30 + $0xd8] sm:$0xff] %vm666_vm1, %v661_v4  ;;  %v631_v14 = vadd.f32 %v1019_v35, %v592_v6  ;;  %677 = vst.msk [vmem:[%s1032_s30 + $0x50] sm:$0xff] %vm666_vm1, %v644_v9  ;;  %v614_v15 = vadd.f32 %v1019_v35, %v575_v11  ;;  %v858_v17 = vpop.f32.mrb[14].mxu0 }
 0x102   : > { %693 = vst.msk [vmem:[%s1032_s30 + $0xd0] sm:$0xff] %vm666_vm1, %v660_v10  ;;  %v630_v16 = vadd.f32 %v1019_v35, %v591_v12  ;;  %v882_v18 = vpop.f32.mrb[14].mxu1  ;;  %v647_v19 = vmax.f32 %v615_v13, 0.0  ;;  %v578_v21 = vmul.f32 %v858_v17, %v1014_v33  ;;  %v467_v23 = vpop.f32.mrb[15].mxu0 }
 0x103   : > { %v663_v20 = vmax.f32 %v631_v14, 0.0  ;;  %v594_v22 = vmul.f32 %v882_v18, %v1014_v33  ;;  %v547_v24 = vpop.f32.mrb[15].mxu1  ;;  %v646_v25 = vmax.f32 %v614_v15, 0.0  ;;  %v577_v27 = vmul.f32 %v1014_v33, %v467_v23 }
 0x104   : > { %v662_v26 = vmax.f32 %v630_v16, 0.0  ;;  %v593_v28 = vmul.f32 %v1014_v33, %v547_v24  ;;  %680 = vst.msk [vmem:[%s1032_s30 + $0x68] sm:$0xff] %vm666_vm1, %v647_v19  ;;  %v617_v29 = vadd.f32 %v1019_v35, %v578_v21 }
 0x105   : > { %696 = vst.msk [vmem:[%s1032_s30 + $0xe8] sm:$0xff] %vm666_vm1, %v663_v20  ;;  %v633_v30 = vadd.f32 %v1019_v35, %v594_v22  ;;  %679 = vst.msk [vmem:[%s1032_s30 + $0x60] sm:$0xff] %vm666_vm1, %v646_v25  ;;  %v616_v31 = vadd.f32 %v1019_v35, %v577_v27 }
 0x106   : > { %695 = vst.msk [vmem:[%s1032_s30 + $0xe0] sm:$0xff] %vm666_vm1, %v662_v26  ;;  %v632_v32 = vadd.f32 %v1019_v35, %v593_v28  ;;  %v649_v34 = vmax.f32 %v617_v29, 0.0 }
 0x107   : > { %v665_v36 = vmax.f32 %v633_v30, 0.0  ;;  %v648_v33 = vmax.f32 %v616_v31, 0.0 }
 0x108   : > { %v664_v37 = vmax.f32 %v632_v32, 0.0  ;;  %682 = vst.msk [vmem:[%s1032_s30 + $0x78] sm:$0xff] %vm666_vm1, %v649_v34 }
 0x109   : > { %698 = vst.msk [vmem:[%s1032_s30 + $0xf8] sm:$0xff] %vm666_vm1, %v665_v36  ;;  %681 = vst.msk [vmem:[%s1032_s30 + $0x70] sm:$0xff] %vm666_vm1, %v648_v33 }
 0x10a   : > { %697 = vst.msk [vmem:[%s1032_s30 + $0xf0] sm:$0xff] %vm666_vm1, %v664_v37 }
 0x10b PF: > { %s14_s15 = sadd.s32 1, %s899_s15  }
 0x10c   : > { %p11_p4 = scmp.ge.s32.totalorder %s14_s15, 4  }
 0x10e   :  { %13 = sbr.rel (!%p11_p4) target bundleno = 1 (0x1), region = 66 }

</bundles_post_ra>
